<compile_context>
chip_gen: v7x
topology: tpu7x:2x2x1
jax: 0.10.0
libtpu: 0.0.40
codegen_flags: <defaults>
</compile_context>

<pallas_src>
import math
import jax
import jax.numpy as jnp
from jax.experimental import pallas as pl
from jax.experimental.pallas import tpu as pltpu

HIDDEN = 128       # hidden size from the module spec (Linear(128 + 1, num_class))
NUM_CLASS = 2
C_PAD = 128        # pad class dim to a full lane width


# ----------------------------------------------------------------------------
# Pallas kernel: fused masked-mean-pool + "concat extra feature + linear" head.
#   hidden[b, :] = sum_s emb[b, s, :] * mask[b, s] / max(sum_s mask[b, s], 1)
#   out[b, c]    = sum_d hidden[b, d] * w_h[d, c] + extra[b] * w_e[c] + bias[c]
# which equals Linear(129, num_class)(cat([hidden, extra], 1)) for c < NUM_CLASS.
# ----------------------------------------------------------------------------
def _fused_pool_head_kernel(emb_ref, mask_ref, extra_ref, w_h_ref, we_b_ref, out_ref):
    emb = emb_ref[...]                                     # (TB, S, 128)
    mask = mask_ref[...]                                   # (TB, S)

    # Masked mean-pool over the sequence axis (hidden never written to HBM).
    summed = jnp.sum(emb * mask[:, :, None], axis=1)                      # (TB, 128)
    denom = jnp.maximum(jnp.sum(mask, axis=1, keepdims=True), 1.0)        # (TB, 1)
    hidden = summed / denom                                               # (TB, 128)

    # Head: one K=128 MXU pass into a lane-dense (TB, 128) tile.
    acc = jnp.dot(hidden, w_h_ref[...], preferred_element_type=jnp.float32)  # (TB, C_PAD)
    acc = acc + extra_ref[...] * we_b_ref[0:1, :]          # extra * w_e   (VPU broadcast)
    acc = acc + we_b_ref[1:2, :]                           # + bias        (VPU broadcast)
    out_ref[...] = acc.astype(out_ref.dtype)


def _pick_batch_tile(batch):
    for tb in (1024, 512, 256, 128, 64, 32, 16, 8):
        if batch % tb == 0:
            return tb
    return batch


def fused_pool_head(emb, mask, extra_feature, w_h_pad, we_b_pad):
    """emb: (B, S, 128) f32, mask: (B, S) f32, extra_feature: (B,) f32,
    w_h_pad: (128, C_PAD) f32, we_b_pad: (2, C_PAD) f32 -> (B, C_PAD) f32 (padded classes)."""
    B, S, H = emb.shape
    assert H == HIDDEN
    c_pad = w_h_pad.shape[1]
    TB = _pick_batch_tile(B)
    extra2d = extra_feature.reshape(B, 1)

    return pl.pallas_call(
        _fused_pool_head_kernel,
        out_shape=jax.ShapeDtypeStruct((B, c_pad), jnp.float32),
        grid=(B // TB,),
        in_specs=[
            pl.BlockSpec((TB, S, H), lambda i: (i, 0, 0)),      # embeddings tile
            pl.BlockSpec((TB, S), lambda i: (i, 0)),            # attention mask tile
            pl.BlockSpec((TB, 1), lambda i: (i, 0)),            # extra feature tile
            pl.BlockSpec((H, c_pad), lambda i: (0, 0)),         # padded hidden weights (resident)
            pl.BlockSpec((2, c_pad), lambda i: (0, 0)),         # fused [w_e; bias] (resident)
        ],
        out_specs=pl.BlockSpec((TB, c_pad), lambda i: (i, 0)),  # lane-dense output tile
        compiler_params=pltpu.CompilerParams(
            dimension_semantics=("parallel",)),
    )(emb, mask, extra2d, w_h_pad, we_b_pad)


# ----------------------------------------------------------------------------
# Pre-laid-out head parameters (done once at init, NOT per forward call).
# ----------------------------------------------------------------------------
def prepare_head_params(weight, bias, c_pad=C_PAD):
    """weight: (num_class, 129) torch-layout, bias: (num_class,)
    -> w_h_pad (128, c_pad), we_b_pad (2, c_pad): row 0 = extra-feature column, row 1 = bias."""
    C = weight.shape[0]
    w_h_pad = jnp.zeros((HIDDEN, c_pad), jnp.float32).at[:, :C].set(
        jnp.transpose(weight[:, :HIDDEN]))
    we_b_pad = jnp.zeros((2, c_pad), jnp.float32)
    we_b_pad = we_b_pad.at[0, :C].set(weight[:, HIDDEN])
    we_b_pad = we_b_pad.at[1, :C].set(bias)
    return w_h_pad, we_b_pad


# ----------------------------------------------------------------------------
# Forward pass. Embedding gather is plain-JAX glue (data-dependent gather);
# the masked pool + head run fused in the Pallas kernel.
# ----------------------------------------------------------------------------
def linear_cls_forward(params, input_ids, attn_masks, token_type_ids, extra_feature,
                       num_class=NUM_CLASS):
    emb = params["tok_emb"][input_ids] + params["type_emb"][token_type_ids]   # (B, S, 128)
    mask = attn_masks.astype(jnp.float32)                                     # (B, S)
    out_pad = fused_pool_head(emb, mask, extra_feature,
                              params["cls_w_h_pad"], params["cls_we_b_pad"])  # (B, C_PAD)
    return out_pad[:, :num_class]                                             # (B, num_class)


# ----------------------------------------------------------------------------
# Parameter init (deterministic, mimics torch.nn.Linear default init for the head)
# ----------------------------------------------------------------------------
def init_params(key, vocab_size=32, num_class=NUM_CLASS):
    k1, k2, k3, k4 = jax.random.split(key, 4)
    bound = 1.0 / math.sqrt(HIDDEN + 1)
    cls_w = jax.random.uniform(k3, (num_class, HIDDEN + 1), jnp.float32,
                               minval=-bound, maxval=bound)
    cls_b = jax.random.uniform(k4, (num_class,), jnp.float32,
                               minval=-bound, maxval=bound)
    w_h_pad, we_b_pad = prepare_head_params(cls_w, cls_b)
    return {
        "tok_emb": jax.random.normal(k1, (vocab_size, HIDDEN), jnp.float32) * 0.02,
        "type_emb": jax.random.normal(k2, (2, HIDDEN), jnp.float32) * 0.02,
        "cls_w": cls_w,            # torch layout (for reference check only)
        "cls_b": cls_b,
        "cls_w_h_pad": w_h_pad,    # kernel-native layouts (used in the forward path)
        "cls_we_b_pad": we_b_pad,
    }


if __name__ == "__main__":
    key = jax.random.PRNGKey(0)
    params = init_params(key)

    B, S = 8, 8
    k_ids, k_mask, k_extra = jax.random.split(jax.random.PRNGKey(1), 3)
    input_ids = jax.random.randint(k_ids, (B, S), 0, 32, dtype=jnp.int32)
    attn_masks = (jax.random.uniform(k_mask, (B, S)) > 0.2).astype(jnp.int32)
    token_type_ids = jnp.zeros((B, S), dtype=jnp.int32)
    extra_feature = jax.random.normal(k_extra, (B,), jnp.float32)

    fwd = jax.jit(linear_cls_forward)
    out = fwd(params, input_ids, attn_masks, token_type_ids, extra_feature)
    out = jax.block_until_ready(out)

    # Reference check (pure JAX): stub encoder pool + explicit concat + dense (torch semantics).
    emb = params["tok_emb"][input_ids] + params["type_emb"][token_type_ids]
    m = attn_masks.astype(jnp.float32)[..., None]
    hidden = jnp.sum(emb * m, axis=1) / jnp.maximum(jnp.sum(m, axis=1), 1.0)
    concat = jnp.concatenate([hidden, extra_feature[:, None]], axis=1)        # (B, 129)
    ref = concat @ params["cls_w"].T + params["cls_b"]

    assert out.shape == (B, NUM_CLASS)
    assert jnp.allclose(out, ref, atol=1e-4, rtol=1e-4)

    print("KERNEL_OK")
</pallas_src>

<mosaic_0001>
module attributes {stable_mosaic.version = 11 : i64} {
  func.func @_fused_pool_head_kernel(%arg0: i32, %arg1: memref<8x8x128xf32, #tpu.memory_space<vmem>>, %arg2: memref<8x8xf32, #tpu.memory_space<vmem>>, %arg3: memref<8x1xf32, #tpu.memory_space<vmem>>, %arg4: memref<128x128xf32, #tpu.memory_space<vmem>>, %arg5: memref<2x128xf32, #tpu.memory_space<vmem>>, %arg6: memref<8x128xf32, #tpu.memory_space<vmem>>) attributes {dimension_semantics = [#tpu.dimension_semantics<parallel>], iteration_bounds = array<i64: 1>, scalar_prefetch = 0 : i64, scratch_operands = 0 : i64, tpu.core_type = #tpu.core_type<tc>, window_params = [{transform_indices = @transform_0, window_bounds = array<i64: 8, 8, 128>}, {transform_indices = @transform_1, window_bounds = array<i64: 8, 8>}, {transform_indices = @transform_2, window_bounds = array<i64: 8, 1>}, {pipeline_mode = #tpu.pipeline_mode<synchronous>, transform_indices = @transform_3, window_bounds = array<i64: 128, 128>}, {pipeline_mode = #tpu.pipeline_mode<synchronous>, transform_indices = @transform_4, window_bounds = array<i64: 2, 128>}, {transform_indices = @transform_5, window_bounds = array<i64: 8, 128>}]} {
    %c0 = arith.constant 0 : index
    %c0_0 = arith.constant 0 : index
    %c0_1 = arith.constant 0 : index
    %0 = vector.load %arg1[%c0, %c0_0, %c0_1] : memref<8x8x128xf32, #tpu.memory_space<vmem>>, vector<8x8x128xf32>
    %c0_2 = arith.constant 0 : index
    %c0_3 = arith.constant 0 : index
    %1 = vector.load %arg2[%c0_2, %c0_3] : memref<8x8xf32, #tpu.memory_space<vmem>>, vector<8x8xf32>
    %2 = vector.shape_cast %1 : vector<8x8xf32> to vector<8x8x1xf32>
    %3 = vector.broadcast %2 : vector<8x8x1xf32> to vector<8x8x128xf32>
    %4 = arith.mulf %0, %3 : vector<8x8x128xf32>
    %cst = arith.constant dense<0.000000e+00> : vector<8x128xf32>
    %5 = vector.multi_reduction <add>, %4, %cst [1] : vector<8x8x128xf32> to vector<8x128xf32>
    %cst_4 = arith.constant dense<0.000000e+00> : vector<8xf32>
    %6 = vector.multi_reduction <add>, %1, %cst_4 [1] : vector<8x8xf32> to vector<8xf32>
    %7 = vector.shape_cast %6 : vector<8xf32> to vector<8x1xf32>
    %cst_5 = arith.constant 1.000000e+00 : f32
    %8 = vector.broadcast %cst_5 : f32 to vector<8x1xf32>
    %9 = arith.maximumf %7, %8 : vector<8x1xf32>
    %10 = vector.broadcast %9 : vector<8x1xf32> to vector<8x128xf32>
    %11 = arith.divf %5, %10 : vector<8x128xf32>
    %c0_6 = arith.constant 0 : index
    %c0_7 = arith.constant 0 : index
    %12 = vector.load %arg4[%c0_6, %c0_7] : memref<128x128xf32, #tpu.memory_space<vmem>>, vector<128x128xf32>
    %cst_8 = arith.constant dense<0.000000e+00> : vector<8x128xf32>
    %13 = tpu.matmul %11, %12, %cst_8 {dimension_numbers = #tpu.dot_dimension_numbers<[1], [0], [0], [1], [0, 0, 1, 1], [], []>} : vector<8x128xf32>, vector<128x128xf32>, vector<8x128xf32> -> vector<8x128xf32>
    %c0_9 = arith.constant 0 : index
    %c0_10 = arith.constant 0 : index
    %14 = vector.load %arg3[%c0_9, %c0_10] : memref<8x1xf32, #tpu.memory_space<vmem>>, vector<8x1xf32>
    %c0_11 = arith.constant 0 : index
    %c0_12 = arith.constant 0 : index
    %15 = vector.load %arg5[%c0_11, %c0_12] : memref<2x128xf32, #tpu.memory_space<vmem>>, vector<1x128xf32>
    %16 = vector.broadcast %14 : vector<8x1xf32> to vector<8x128xf32>
    %17 = vector.broadcast %15 : vector<1x128xf32> to vector<8x128xf32>
    %18 = arith.mulf %16, %17 : vector<8x128xf32>
    %19 = arith.addf %13, %18 : vector<8x128xf32>
    %c1 = arith.constant 1 : index
    %c0_13 = arith.constant 0 : index
    %20 = vector.load %arg5[%c1, %c0_13] : memref<2x128xf32, #tpu.memory_space<vmem>>, vector<1x128xf32>
    %21 = vector.broadcast %20 : vector<1x128xf32> to vector<8x128xf32>
    %22 = arith.addf %19, %21 : vector<8x128xf32>
    %c0_14 = arith.constant 0 : index
    %c0_15 = arith.constant 0 : index
    %23 = vector.load %arg6[%c0_14, %c0_15] : memref<8x128xf32, #tpu.memory_space<vmem>>, vector<8x128xf32>
    tpu.vector_store %arg6[%c0_14, %c0_15], %22 {strides = array<i32>} : memref<8x128xf32, #tpu.memory_space<vmem>>, vector<8x128xf32>,
    return
  }
  func.func @transform_0(%arg0: i32) -> (i32, i32, i32) {
    %c0_i32 = arith.constant 0 : i32
    %c0_i32_0 = arith.constant 0 : i32
    %c0_i32_1 = arith.constant 0 : i32
    return %arg0, %c0_i32, %c0_i32_0 : i32, i32, i32
  }
  func.func @transform_1(%arg0: i32) -> (i32, i32) {
    %c0_i32 = arith.constant 0 : i32
    %c0_i32_0 = arith.constant 0 : i32
    return %arg0, %c0_i32 : i32, i32
  }
  func.func @transform_2(%arg0: i32) -> (i32, i32) {
    %c0_i32 = arith.constant 0 : i32
    %c0_i32_0 = arith.constant 0 : i32
    return %arg0, %c0_i32 : i32, i32
  }
  func.func @transform_3(%arg0: i32) -> (i32, i32) {
    %c0_i32 = arith.constant 0 : i32
    %c0_i32_0 = arith.constant 0 : i32
    %c0_i32_1 = arith.constant 0 : i32
    return %c0_i32, %c0_i32_0 : i32, i32
  }
  func.func @transform_4(%arg0: i32) -> (i32, i32) {
    %c0_i32 = arith.constant 0 : i32
    %c0_i32_0 = arith.constant 0 : i32
    %c0_i32_1 = arith.constant 0 : i32
    return %c0_i32, %c0_i32_0 : i32, i32
  }
  func.func @transform_5(%arg0: i32) -> (i32, i32) {
    %c0_i32 = arith.constant 0 : i32
    %c0_i32_0 = arith.constant 0 : i32
    return %arg0, %c0_i32 : i32, i32
  }
}

</mosaic_0001>

<bundles_post_ra>
// kernel: linear_cls_forward.1
= control target key start
LH: loop header
LB: loop body
LE: loop exit
PB: predicated region body
PF: predicated region fallthrough
CT: control target
= control target key end

     0   :  { %vm141_vm0 = vcmask 64512   ;;  %v29_v0 = vlaneseq  ;;  %v416_v14 = vmov 0.0|0.0   ;;  %vm417_vm1 = vmmov 0   ;;  %s537_s1 = inlined_call_operand.vmem [shape: f32[8,8], index: 1, kind: input, shape index: {}]   ;;  %s538_s3 = inlined_call_operand.vmem [shape: f32[128,128], index: 3, kind: input, shape index: {}]   ;;  %s539_s2 = inlined_call_operand.vmem [shape: f32[8,1], index: 2, kind: input, shape index: {}]   ;;  %s540_s0 = inlined_call_operand.vmem [shape: f32[8,8,128], index: 0, kind: input, shape index: {}]   ;;  %s541_s4 = inlined_call_operand.vmem [shape: f32[2,128], index: 4, kind: input, shape index: {}]   ;;  %s542_s5 = inlined_call_operand.vmem [shape: f32[8,128], index: 5, kind: output, shape index: {}]  }
   0x1   :  { %v28_v1 = vld [vmem:[%s537_s1] sm:$0xff]  ;;  %v179_v12 = vld [vmem:[%s538_s3 + $0x8] sm:$0xff]  ;;  %371 = vmatprep.subr.bf16.mxu0 %v416_v14  ;;  %v180_v17 = vld [vmem:[%s538_s3 + $0x10] sm:$0xff]  ;;  %v418_v45 = vmov 0.0   ;;  %v419_v46 = vmov 0   ;;  %vm215_vm2 = vcmask 1041409  }
   0x2   :  { %v142_v2 = vsel %vm141_vm0, %v28_v1, 0.0  ;;  %v30_v3 = vshrl.u32 %v29_v0, 7  ;;  %v178_v11 = vld [vmem:[%s538_s3] sm:$0xff]  ;;  %v181_v18 = vld [vmem:[%s538_s3 + $0x18] sm:$0xff]  ;;  %v183_v25 = vld [vmem:[%s538_s3 + $0x28] sm:$0xff]  ;;  %368 = vmatprep.mubr.msk.f32.mxu0 %vm417_vm1, %v418_v45  ;;  %399 = vset.pattern.permute.xlu0 %v419_v46  ;;  %vm218_vm3 = vcmask 1042434  }
   0x3   :  { %143 = vadd.xlane.f32.xlu0 %v142_v2  ;;  %v372_v13 = vpack.c.bf16 %v179_v12, %v178_v11  ;;  %v375_v20 = vpack.c.bf16 %v181_v18, %v180_v17  ;;  %v182_v24 = vld [vmem:[%s538_s3 + $0x20] sm:$0xff]  ;;  %v184_v29 = vld [vmem:[%s538_s3 + $0x30] sm:$0xff]  ;;  %v185_v30 = vld [vmem:[%s538_s3 + $0x38] sm:$0xff]  ;;  %vm221_vm4 = vcmask 1043459   ;;  %vm224_vm5 = vcmask 1044484  }
   0x4   :  { %v45_v4 = vsub.s32 2, %v30_v3  ;;  %v31_v5 = vsub.s32 0, %v30_v3  ;;  %v52_v8 = vsub.s32 3, %v30_v3  ;;  %v59_v10 = vsub.s32 4, %v30_v3  ;;  %v186_v33 = vld [vmem:[%s538_s3 + $0x40] sm:$0xff]  ;;  %v187_v34 = vld [vmem:[%s538_s3 + $0x48] sm:$0xff] }
   0x5   :  { %373 = vmatpush3.bf16.msra.mxu0 %v372_v13  ;;  %v66_v16 = vsub.s32 5, %v30_v3  ;;  %v38_v19 = vsub.s32 1, %v30_v3  ;;  %v73_v22 = vsub.s32 6, %v30_v3  ;;  %v378_v26 = vpack.c.bf16 %v183_v25, %v182_v24  ;;  %v188_v36 = vld [vmem:[%s538_s3 + $0x50] sm:$0xff]  ;;  %v189_v37 = vld [vmem:[%s538_s3 + $0x58] sm:$0xff]  ;;  %v190_v39 = vld [vmem:[%s538_s3 + $0x60] sm:$0xff] }
   0x6   :  { %v46_v6 = vrot.slane %v28_v1, %v45_v4  ;;  %v32_v7 = vrot.slane %v28_v1, %v31_v5  ;;  %v53_v9 = vrot.slane %v28_v1, %v52_v8  ;;  %v60_v15 = vrot.slane %v28_v1, %v59_v10  ;;  %374 = vmatprep.subr.bf16.mxu0 %v416_v14  ;;  %v191_v40 = vld [vmem:[%s538_s3 + $0x68] sm:$0xff]  ;;  %v192_v42 = vld [vmem:[%s538_s3 + $0x70] sm:$0xff]  ;;  %v193_v43 = vld [vmem:[%s538_s3 + $0x78] sm:$0xff] }
   0x7   :  { %v67_v21 = vrot.slane %v28_v1, %v66_v16  ;;  %v39_v23 = vrot.slane %v28_v1, %v38_v19  ;;  %v74_v27 = vrot.slane %v28_v1, %v73_v22  ;;  %v80_v28 = vsub.s32 7, %v30_v3  ;;  %v194_v47 = vld [vmem:[%s539_s2] sm:$0xff]  ;;  %v22_v51 = vld [vmem:[%s540_s0 + $0x10] sm:$0xff]  ;;  %v23_v53 = vld [vmem:[%s540_s0 + $0x18] sm:$0xff] }
   0x8   :  { %48 = vbcast.lane.b32.xlu1 %v46_v6, 256  ;;  %v381_v31 = vpack.c.bf16 %v185_v30, %v184_v29  ;;  %v384_v35 = vpack.c.bf16 %v187_v34, %v186_v33  ;;  %v387_v38 = vpack.c.bf16 %v189_v37, %v188_v36  ;;  %v390_v41 = vpack.c.bf16 %v191_v40, %v190_v39  ;;  %v20_v52 = vld [vmem:[%s540_s0] sm:$0xff]  ;;  %v25_v59 = vld [vmem:[%s540_s0 + $0x28] sm:$0xff]  ;;  %v27_v10 = vld [vmem:[%s540_s0 + $0x38] sm:$0xff] }
   0x9   :  { %376 = vmatpush3.bf16.msra.mxu0 %v375_v20  ;;  %v81_v32 = vrot.slane %v28_v1, %v80_v28  ;;  %v393_v44 = vpack.c.bf16 %v193_v43, %v192_v42  ;;  %v24_v56 = vld [vmem:[%s540_s0 + $0x20] sm:$0xff]  ;;  %v26_v1 = vld [vmem:[%s540_s0 + $0x30] sm:$0xff]  ;;  %v21_v16 = vld [vmem:[%s540_s0 + $0x8] sm:$0xff]  ;;  %vm227_vm6 = vcmask 1045509   ;;  %vm230_vm7 = vcmask 1046534  }
   0xa   :  { %377 = vmatprep.subr.bf16.mxu0 %v416_v14  ;;  %vm233_vm8 = vcmask 1047559  }
   0xc   :  { %34 = vbcast.lane.b32.xlu1 %v32_v7, 256 }
   0xd   :  { %379 = vmatpush3.bf16.msra.mxu0 %v378_v26 }
   0xe   :  { %380 = vmatprep.subr.bf16.mxu0 %v416_v14 }
  0x10   :  { %55 = vbcast.lane.b32.xlu1 %v53_v9, 256 }
  0x11   :  { %382 = vmatpush3.bf16.msra.mxu0 %v381_v31 }
  0x12   :  { %383 = vmatprep.subr.bf16.mxu0 %v416_v14 }
  0x14   :  { %62 = vbcast.lane.b32.xlu1 %v60_v15, 256 }
  0x15   :  { %385 = vmatpush3.bf16.msra.mxu0 %v384_v35 }
  0x16   :  { %386 = vmatprep.subr.bf16.mxu0 %v416_v14 }
  0x18   :  { %69 = vbcast.lane.b32.xlu1 %v67_v21, 256 }
  0x19   :  { %41 = vbcast.lane.b32.xlu0 %v39_v23, 256  ;;  %388 = vmatpush3.bf16.msra.mxu0 %v387_v38 }
  0x1a   :  { %389 = vmatprep.subr.bf16.mxu0 %v416_v14 }
  0x1c   :  { %76 = vbcast.lane.b32.xlu1 %v74_v27, 256 }
  0x1d   :  { %391 = vmatpush3.bf16.msra.mxu0 %v390_v41  ;;  %198 = vperm.xlu0 %399, %v194_v47  }
  0x1e   :  { %392 = vmatprep.subr.bf16.mxu0 %v416_v14 }
  0x20   :  { %83 = vbcast.lane.b32.xlu1 %v81_v32, 256 }
  0x21   :  { %394 = vmatpush3.bf16.msra.mxu0 %v393_v44 }
  0x7a   :  { %v49_v48 = vpop.permute.xlu1 %48 }
  0x7b   :  { %v87_v55 = vmul.f32 %v49_v48, %v22_v51 }
  0x7d   :  { %v105_v62 = vrot.slane %v87_v55, 4 }
  0x7e   :  { %v35_v49 = vpop.permute.xlu1 %34 }
  0x7f   :  { %v85_v57 = vmul.f32 %v35_v49, %v20_v52  ;;  %v106_v5 = vadd.f32 %v105_v62, %v87_v55 }
  0x81   :  { %v93_v63 = vrot.slane %v85_v57, 4  ;;  %v107_v17 = vrot.slane %v106_v5, 2 }
  0x82   :  { %v56_v50 = vpop.permute.xlu1 %55 }
  0x83   :  { %v88_v58 = vmul.f32 %v56_v50, %v23_v53  ;;  %v94_v7 = vadd.f32 %v93_v63, %v85_v57  ;;  %v108_v35 = vadd.f32 %v107_v17, %v106_v5 }
  0x85   :  { %v111_v2 = vrot.slane %v88_v58, 4  ;;  %v95_v20 = vrot.slane %v94_v7, 2  ;;  %v109_v48 = vrot.slane %v108_v35, 1 }
  0x86   :  { %v63_v54 = vpop.permute.xlu1 %62 }
  0x87   :  { %v89_v60 = vmul.f32 %v63_v54, %v24_v56  ;;  %v112_v11 = vadd.f32 %v111_v2, %v88_v58  ;;  %v96_v41 = vadd.f32 %v95_v20, %v94_v7 }
  0x89   :  { %v117_v3 = vrot.slane %v89_v60, 4  ;;  %v113_v25 = vrot.slane %v112_v11, 2  ;;  %v97_v50 = vrot.slane %v96_v41, 1 }
  0x8a   :  { %v70_v61 = vpop.permute.xlu1 %69 }
  0x8b   :  { %v90_v0 = vmul.f32 %v70_v61, %v25_v59  ;;  %v118_v14 = vadd.f32 %v117_v3, %v89_v60  ;;  %v114_v42 = vadd.f32 %v113_v25, %v112_v11  ;;  %v110_v59 = vadd.f32 %v109_v48, %v108_v35  ;;  %v318_v35 = vld [vmem:[%s541_s4 + $0x1] ss:$0 sm:$0xff] }
  0x8c   :  { %v98_v62 = vadd.f32 %v97_v50, %v96_v41 }
  0x8d   :  { %v123_v8 = vrot.slane %v90_v0, 4  ;;  %v119_v29 = vrot.slane %v118_v14, 2  ;;  %v115_v51 = vrot.slane %v114_v42, 1 }
  0x8e   :  { %v77_v4 = vpop.permute.xlu1 %76 }
  0x8f   :  { %v91_v6 = vmul.f32 %v77_v4, %v26_v1  ;;  %v124_v21 = vadd.f32 %v123_v8, %v90_v0  ;;  %v120_v43 = vadd.f32 %v119_v29, %v118_v14  ;;  %v116_v63 = vadd.f32 %v115_v51, %v114_v42 }
  0x90   :  { %v144_v9 = vpop.xlane.xlu0 %143 }
  0x91   :  { %v129_v12 = vrot.slane %v91_v6, 4  ;;  %v145_v13 = vmax.f32 %v144_v9, 1.0  ;;  %v125_v36 = vrot.slane %v124_v21, 2  ;;  %v121_v52 = vrot.slane %v120_v43, 1 }
  0x92   :  { %v84_v15 = vpop.permute.xlu1 %83 }
  0x93   :  { %v130_v18 = vadd.f32 %v129_v12, %v91_v6  ;;  %v92_v19 = vmul.f32 %v84_v15, %v27_v10  ;;  %v147_v22 = vrot.slane %v145_v13, 1  ;;  %v148_v24 = vrot.slane %v145_v13, 2 }
  0x94   :  { %v42_v23 = vpop.permute.xlu0 %41  ;;  %v149_v28 = vrot.slane %v145_v13, 3  ;;  %400 = vrcp.f32 %v145_v13  ;;  %v150_v31 = vrot.slane %v145_v13, 4  ;;  %v151_v34 = vrot.slane %v145_v13, 5 }
  0x95   :  { %v135_v26 = vrot.slane %v92_v19, 4  ;;  %v86_v27 = vmul.f32 %v42_v23, %v21_v16  ;;  %v131_v30 = vrot.slane %v130_v18, 2  ;;  %402 = vrcp.f32 %v147_v22 }
  0x96   :  { %v152_v37 = vrot.slane %v145_v13, 6  ;;  %404 = vrcp.f32 %v148_v24  ;;  %v153_v40 = vrot.slane %v145_v13, 7  ;;  %v126_v46 = vadd.f32 %v125_v36, %v124_v21 }
  0x97   :  { %v136_v32 = vadd.f32 %v135_v26, %v92_v19  ;;  %v99_v33 = vrot.slane %v86_v27, 4  ;;  %406 = vrcp.f32 %v149_v28  ;;  %v132_v44 = vadd.f32 %v131_v30, %v130_v18 }
  0x98   :  { %408 = vrcp.f32 %v150_v31  ;;  %v127_v56 = vrot.slane %v126_v46, 1  ;;  %v122_v1 = vadd.f32 %v121_v52, %v120_v43  ;;  %v317_v31 = vld [vmem:[%s541_s4] ss:$0 sm:$0xff] }
  0x99   :  { %v137_v38 = vrot.slane %v136_v32, 2  ;;  %v100_v39 = vadd.f32 %v99_v33, %v86_v27  ;;  %410 = vrcp.f32 %v151_v34  ;;  %v133_v53 = vrot.slane %v132_v44, 1 }
  0x9a   :  { %412 = vrcp.f32 %v152_v37  ;;  %v128_v6 = vadd.f32 %v127_v56, %v126_v46 }
  0x9b   :  { %v101_v45 = vrot.slane %v100_v39, 2  ;;  %v138_v47 = vadd.f32 %v137_v38, %v136_v32  ;;  %414 = vrcp.f32 %v153_v40  ;;  %v134_v2 = vadd.f32 %v133_v53, %v132_v44 }
  0x9c   :  { %v199_v32 = vpop.permute.xlu0 %198 }
  0x9d   :  { %v102_v49 = vadd.f32 %v101_v45, %v100_v39  ;;  %v139_v57 = vrot.slane %v138_v47, 1  ;;  %v205_v33 = vmul.f32 %v317_v31, %v199_v32 }
  0x9e   :  { %v401_v55 = vpop.eup %400 }
  0x9f   :  { %v103_v54 = vrot.slane %v102_v49, 1  ;;  %v403_v58 = vpop.eup %402  ;;  %v140_v7 = vadd.f32 %v139_v57, %v138_v47  ;;  %v163_v10 = vmul.f32 %v401_v55, %v98_v62 }
  0xa0   :  { %v405_v61 = vpop.eup %404 }
  0xa1   :  { %v104_v60 = vadd.f32 %v103_v54, %v102_v49  ;;  %v407_v0 = vpop.eup %406  ;;  %v167_v4 = vmul.f32 %v405_v61, %v110_v59 }
  0xa2   :  { %v409_v5 = vpop.eup %408  ;;  %v169_v8 = vmul.f32 %v407_v0, %v116_v63 }
  0xa3   :  { %v165_v3 = vmul.f32 %v403_v58, %v104_v60  ;;  %v411_v9 = vpop.eup %410  ;;  %v171_v12 = vmul.f32 %v409_v5, %v122_v1  ;;  %v217_v15 = vrot.slane %v167_v4, 6 }
  0xa4   :  { %v413_v13 = vpop.eup %412  ;;  %v173_v14 = vmul.f32 %v411_v9, %v128_v6  ;;  %v220_v19 = vrot.slane %v169_v8, 5 }
  0xa5   :  { %v214_v11 = vrot.slane %v165_v3, 7  ;;  %v415_v16 = vpop.eup %414  ;;  %v175_v18 = vmul.f32 %v413_v13, %v134_v2  ;;  %v223_v22 = vrot.slane %v171_v12, 4 }
  0xa6   :  { %v177_v20 = vmul.f32 %v415_v16, %v140_v7  ;;  %v226_v24 = vrot.slane %v173_v14, 3 }
  0xa7   :  { %v216_v17 = vsel %vm215_vm2, %v214_v11, %v163_v10  ;;  %v229_v26 = vrot.slane %v175_v18, 2 }
  0xa8   :  { %v219_v21 = vsel %vm218_vm3, %v217_v15, %v216_v17  ;;  %v232_v28 = vrot.slane %v177_v20, 1 }
  0xa9   :  { %v222_v23 = vsel %vm221_vm4, %v220_v19, %v219_v21 }
  0xaa   :  { %v225_v25 = vsel %vm224_vm5, %v223_v22, %v222_v23 }
  0xab   :  { %v228_v27 = vsel %vm227_vm6, %v226_v24, %v225_v25 }
  0xac   :  { %v231_v29 = vsel %vm230_vm7, %v229_v26, %v228_v27 }
  0xad   :  { %v234_v30 = vsel %vm233_vm8, %v232_v28, %v231_v29 }
  0xae   :  { %369 = vmatmul.mubr.f32.vlgmr.msra.gmra.mrb[0].mxu0 %v234_v30 }
 0x181   :  { %v302_v34 = vpop.f32.mrb[0].mxu0 }
 0x182   :  { %v303_v36 = vadd.f32 %v302_v34, %v205_v33  ;;  %v370_v37 = vpop.f32.mrb[1].mxu0 }
 0x184   :  { %v311_v38 = vadd.f32 %v318_v35, %v303_v36 }
 0x186   :  { %312 = vst [vmem:[%s542_s5] sm:$0xff] %v311_v38 }

</bundles_post_ra>
